<compile_context>
chip_gen: v7x
topology: tpu7x:2x2x1
jax: 0.10.0
libtpu: 0.0.40
codegen_flags: <defaults>
</compile_context>

<pallas_src>
import jax
import jax.numpy as jnp
from jax.experimental import pallas as pl
from jax.experimental.pallas import tpu as pltpu


def _round_up(x, m):
    return ((x + m - 1) // m) * m


# --------------------------------------------------------------------------
# Kernel: entire MLP fused in VMEM for one batch tile.
# --------------------------------------------------------------------------
def _fused_mlp_kernel(
    x_ref,
    w1_ref, b1_ref,
    w2_ref, b2_ref,
    w3_ref, b3_ref,
    wc_ref, bc_ref,
    out_ref,
):
    # bf16 matmul inputs, f32 accumulation, f32 elementwise (bias + ReLU).
    h = x_ref[...].astype(jnp.bfloat16)

    h = jnp.maximum(
        jnp.dot(h, w1_ref[...], preferred_element_type=jnp.float32) + b1_ref[...], 0.0)
    h = jnp.maximum(
        jnp.dot(h.astype(jnp.bfloat16), w2_ref[...],
                preferred_element_type=jnp.float32) + b2_ref[...], 0.0)
    h = jnp.maximum(
        jnp.dot(h.astype(jnp.bfloat16), w3_ref[...],
                preferred_element_type=jnp.float32) + b3_ref[...], 0.0)

    # Classifier (output padded to a lane-dense width; sliced in the wrapper).
    logits = (jnp.dot(h.astype(jnp.bfloat16), wc_ref[...],
                      preferred_element_type=jnp.float32) + bc_ref[...])
    out_ref[...] = logits.astype(out_ref.dtype)


# --------------------------------------------------------------------------
# Wrapper
# --------------------------------------------------------------------------
def _choose_batch_tile(B, requested):
    """Clamp the batch tile to the batch, keep it a multiple of 8 (sublane),
    and guarantee >= 2 grid steps when the batch is big enough (v7x: 2 TCs)."""
    B8 = _round_up(max(B, 1), 8)
    tile = max(8, min(int(requested), B8))
    if B8 >= 16:
        tile = min(tile, _round_up((B8 + 1) // 2, 8))
    return _round_up(tile, 8)


def improved_protein_classifier_forward(x, folded_params, num_classes, *, batch_tile=512):
    """x: (B, input_dim) float32.  folded_params: output of fold_and_pad_params."""
    B, D = x.shape
    C_pad = folded_params["wc"].shape[1]

    tile = _choose_batch_tile(B, batch_tile)
    B_pad = _round_up(B, tile)
    if B_pad != B:
        x = jnp.pad(x, ((0, B_pad - B), (0, 0)))

    flat_params = (
        folded_params["w1"], folded_params["b1"],
        folded_params["w2"], folded_params["b2"],
        folded_params["w3"], folded_params["b3"],
        folded_params["wc"], folded_params["bc"],
    )

    def rep_spec(shape):
        # Full-extent replicated block (all params easily fit VMEM).
        return pl.BlockSpec(shape, lambda i: (0,) * len(shape))

    in_specs = [pl.BlockSpec((tile, D), lambda i: (i, 0))]
    in_specs += [rep_spec(p.shape) for p in flat_params]
    out_spec = pl.BlockSpec((tile, C_pad), lambda i: (i, 0))

    h1 = folded_params["w1"].shape[1]
    h2 = folded_params["w2"].shape[1]
    h3 = folded_params["w3"].shape[1]
    flops = 2 * B_pad * (D * h1 + h1 * h2 + h2 * h3 + h3 * C_pad)
    bytes_accessed = (
        4 * B_pad * D                                   # x (f32)
        + sum(int(p.size) * p.dtype.itemsize for p in flat_params)
        + 4 * B_pad * C_pad)                            # logits (f32)
    cost = pl.CostEstimate(flops=flops, transcendentals=0,
                           bytes_accessed=bytes_accessed)

    out_padded = pl.pallas_call(
        _fused_mlp_kernel,
        out_shape=jax.ShapeDtypeStruct((B_pad, C_pad), jnp.float32),
        grid_spec=pltpu.PrefetchScalarGridSpec(
            num_scalar_prefetch=0,
            grid=(B_pad // tile,),
            in_specs=in_specs,
            out_specs=out_spec,
        ),
        compiler_params=pltpu.CompilerParams(
            dimension_semantics=("parallel",),
        ),
        cost_estimate=cost,
    )(x, *flat_params)

    # Strip batch padding and the lane padding of the classifier output.
    # (If the downstream consumer can take padded logits, return out_padded
    #  directly to save one HBM round-trip over the logits.)
    return out_padded[:B, :num_classes]


# --------------------------------------------------------------------------
# Parameter construction (matches the PyTorch module's _init_weights) and
# BN-fold + bf16-cast + lane-pad prep for the kernel.
# --------------------------------------------------------------------------
def init_params(key, input_dim, num_classes, hidden_dims=(512, 256, 128)):
    """kaiming_normal_(mode='fan_out', nonlinearity='relu') Linear weights,
    zero biases; BatchNorm gamma=1, beta=0, running_mean=0, running_var=1."""
    eps = 1e-5
    params = {}
    dims = [input_dim] + list(hidden_dims)
    keys = jax.random.split(key, len(hidden_dims) + 1)

    for idx, (din, dout) in enumerate(zip(dims[:-1], dims[1:]), start=1):
        std = (2.0 / dout) ** 0.5  # gain sqrt(2) / sqrt(fan_out)
        # stored as (in, out): transpose of the PyTorch (out, in) weight
        params[f"w{idx}"] = (std * jax.random.normal(keys[idx - 1], (din, dout))).astype(jnp.float32)
        params[f"b{idx}"] = jnp.zeros((1, dout), jnp.float32)
        gamma = jnp.ones((1, dout), jnp.float32)
        beta = jnp.zeros((1, dout), jnp.float32)
        r_mean = jnp.zeros((1, dout), jnp.float32)
        r_var = jnp.ones((1, dout), jnp.float32)
        scale = gamma / jnp.sqrt(r_var + eps)
        shift = beta - r_mean * scale
        params[f"s{idx}"] = scale
        params[f"t{idx}"] = shift

    d_last = hidden_dims[-1]
    std = (2.0 / num_classes) ** 0.5
    params["wc"] = (std * jax.random.normal(keys[-1], (d_last, num_classes))).astype(jnp.float32)
    params["bc"] = jnp.zeros((1, num_classes), jnp.float32)
    return params


def fold_and_pad_params(raw, *, lane_multiple=128):
    """Fold each eval-mode BN affine (s_i, t_i) into the NEXT Linear layer,
    zero-pad the classifier weights/bias to a lane-dense output width, and
    cast the weight matrices to bf16 (fold math done in f32; biases stay f32)."""
    w1 = raw["w1"]
    b1 = raw["b1"]
    # (h * s + t) @ W + b  ==  h @ (s^T * W) + (t @ W + b)
    w2 = raw["s1"].reshape(-1, 1) * raw["w2"]
    b2 = raw["b2"] + raw["t1"] @ raw["w2"]
    w3 = raw["s2"].reshape(-1, 1) * raw["w3"]
    b3 = raw["b3"] + raw["t2"] @ raw["w3"]
    wc = raw["s3"].reshape(-1, 1) * raw["wc"]
    bc = raw["bc"] + raw["t3"] @ raw["wc"]

    num_classes = wc.shape[1]
    c_pad = _round_up(num_classes, lane_multiple)
    if c_pad != num_classes:
        wc = jnp.pad(wc, ((0, 0), (0, c_pad - num_classes)))
        bc = jnp.pad(bc, ((0, 0), (0, c_pad - num_classes)))

    return {"w1": w1.astype(jnp.bfloat16), "b1": b1,
            "w2": w2.astype(jnp.bfloat16), "b2": b2,
            "w3": w3.astype(jnp.bfloat16), "b3": b3,
            "wc": wc.astype(jnp.bfloat16), "bc": bc}


def reference_forward_f32(x, raw_params):
    """Pure-JAX f32 reference: unfolded Linear -> ReLU -> BN(eval) per layer."""
    h = x.astype(jnp.float32)
    for idx in (1, 2, 3):
        h = h @ raw_params[f"w{idx}"] + raw_params[f"b{idx}"]
        h = jnp.maximum(h, 0.0)
        h = h * raw_params[f"s{idx}"] + raw_params[f"t{idx}"]
    return h @ raw_params["wc"] + raw_params["bc"]


def reference_forward_folded_bf16(x, folded, num_classes):
    """Pure-JAX reference matching the kernel's bf16-matmul / f32-accumulate path."""
    h = x.astype(jnp.float32)
    for w, b in ((folded["w1"], folded["b1"]),
                 (folded["w2"], folded["b2"]),
                 (folded["w3"], folded["b3"])):
        h = jnp.dot(h.astype(jnp.bfloat16), w, preferred_element_type=jnp.float32) + b
        h = jnp.maximum(h, 0.0)
    out = jnp.dot(h.astype(jnp.bfloat16), folded["wc"],
                  preferred_element_type=jnp.float32) + folded["bc"]
    return out[:, :num_classes]


if __name__ == "__main__":
    key = jax.random.PRNGKey(0)
    k_x1, k_x2, k_p = jax.random.split(key, 3)

    input_dim = 64
    num_classes = 10

    raw_params = init_params(k_p, input_dim, num_classes)
    folded = fold_and_pad_params(raw_params)

    # Small batch (clamped-tile, single-grid-step path).
    batch = 8
    x = jax.random.normal(k_x1, (batch, input_dim), dtype=jnp.float32)
    out = improved_protein_classifier_forward(x, folded, num_classes)
    out = jax.block_until_ready(out)
    assert out.shape == (batch, num_classes)
    ref_bf16 = reference_forward_folded_bf16(x, folded, num_classes)
    ref_f32 = reference_forward_f32(x, raw_params)
    assert jnp.allclose(out, ref_bf16, atol=1e-2, rtol=1e-2), "mismatch vs bf16 reference (small batch)"
    assert jnp.allclose(out, ref_f32, atol=0.25, rtol=0.05), "mismatch vs f32 reference (small batch)"

    # Non-multiple batch exercising cdiv + zero-padding with a multi-step grid.
    batch2 = 40
    x2 = jax.random.normal(k_x2, (batch2, input_dim), dtype=jnp.float32)
    out2 = improved_protein_classifier_forward(x2, folded, num_classes, batch_tile=16)
    out2 = jax.block_until_ready(out2)
    assert out2.shape == (batch2, num_classes)
    ref2_bf16 = reference_forward_folded_bf16(x2, folded, num_classes)
    ref2_f32 = reference_forward_f32(x2, raw_params)
    assert jnp.allclose(out2, ref2_bf16, atol=1e-2, rtol=1e-2), "mismatch vs bf16 reference (padded batch)"
    assert jnp.allclose(out2, ref2_f32, atol=0.25, rtol=0.05), "mismatch vs f32 reference (padded batch)"

    print("KERNEL_OK")
</pallas_src>

<mosaic_0001>
module attributes {stable_mosaic.version = 11 : i64} {
  func.func @_fused_mlp_kernel(%arg0: i32, %arg1: memref<8x64xf32, #tpu.memory_space<vmem>>, %arg2: memref<64x512xbf16, #tpu.memory_space<vmem>>, %arg3: memref<1x512xf32, #tpu.memory_space<vmem>>, %arg4: memref<512x256xbf16, #tpu.memory_space<vmem>>, %arg5: memref<1x256xf32, #tpu.memory_space<vmem>>, %arg6: memref<256x128xbf16, #tpu.memory_space<vmem>>, %arg7: memref<1x128xf32, #tpu.memory_space<vmem>>, %arg8: memref<128x128xbf16, #tpu.memory_space<vmem>>, %arg9: memref<1x128xf32, #tpu.memory_space<vmem>>, %arg10: memref<8x128xf32, #tpu.memory_space<vmem>>) attributes {dimension_semantics = [#tpu.dimension_semantics<parallel>], iteration_bounds = array<i64: 1>, scalar_prefetch = 0 : i64, scratch_operands = 0 : i64, tpu.core_type = #tpu.core_type<tc>, window_params = [{transform_indices = @transform_0, window_bounds = array<i64: 8, 64>}, {pipeline_mode = #tpu.pipeline_mode<synchronous>, transform_indices = @transform_1, window_bounds = array<i64: 64, 512>}, {pipeline_mode = #tpu.pipeline_mode<synchronous>, transform_indices = @transform_2, window_bounds = array<i64: 1, 512>}, {pipeline_mode = #tpu.pipeline_mode<synchronous>, transform_indices = @transform_3, window_bounds = array<i64: 512, 256>}, {pipeline_mode = #tpu.pipeline_mode<synchronous>, transform_indices = @transform_4, window_bounds = array<i64: 1, 256>}, {pipeline_mode = #tpu.pipeline_mode<synchronous>, transform_indices = @transform_5, window_bounds = array<i64: 256, 128>}, {pipeline_mode = #tpu.pipeline_mode<synchronous>, transform_indices = @transform_6, window_bounds = array<i64: 1, 128>}, {pipeline_mode = #tpu.pipeline_mode<synchronous>, transform_indices = @transform_7, window_bounds = array<i64: 128, 128>}, {pipeline_mode = #tpu.pipeline_mode<synchronous>, transform_indices = @transform_8, window_bounds = array<i64: 1, 128>}, {transform_indices = @transform_9, window_bounds = array<i64: 8, 128>}]} {
    %c0 = arith.constant 0 : index
    %c0_0 = arith.constant 0 : index
    %0 = vector.load %arg1[%c0, %c0_0] : memref<8x64xf32, #tpu.memory_space<vmem>>, vector<8x64xf32>
    %1 = arith.truncf %0 : vector<8x64xf32> to vector<8x64xbf16>
    %c0_1 = arith.constant 0 : index
    %c0_2 = arith.constant 0 : index
    %2 = vector.load %arg2[%c0_1, %c0_2] : memref<64x512xbf16, #tpu.memory_space<vmem>>, vector<64x512xbf16>
    %cst = arith.constant dense<0.000000e+00> : vector<8x512xf32>
    %3 = tpu.matmul %1, %2, %cst {dimension_numbers = #tpu.dot_dimension_numbers<[1], [0], [0], [1], [0, 0, 1, 1], [], []>} : vector<8x64xbf16>, vector<64x512xbf16>, vector<8x512xf32> -> vector<8x512xf32>
    %c0_3 = arith.constant 0 : index
    %c0_4 = arith.constant 0 : index
    %4 = vector.load %arg3[%c0_3, %c0_4] : memref<1x512xf32, #tpu.memory_space<vmem>>, vector<1x512xf32>
    %5 = vector.broadcast %4 : vector<1x512xf32> to vector<8x512xf32>
    %6 = arith.addf %3, %5 : vector<8x512xf32>
    %cst_5 = arith.constant 0.000000e+00 : f32
    %7 = vector.broadcast %cst_5 : f32 to vector<8x512xf32>
    %8 = arith.maximumf %6, %7 : vector<8x512xf32>
    %9 = arith.truncf %8 : vector<8x512xf32> to vector<8x512xbf16>
    %c0_6 = arith.constant 0 : index
    %c0_7 = arith.constant 0 : index
    %10 = vector.load %arg4[%c0_6, %c0_7] : memref<512x256xbf16, #tpu.memory_space<vmem>>, vector<512x256xbf16>
    %cst_8 = arith.constant dense<0.000000e+00> : vector<8x256xf32>
    %11 = tpu.matmul %9, %10, %cst_8 {dimension_numbers = #tpu.dot_dimension_numbers<[1], [0], [0], [1], [0, 0, 1, 1], [], []>} : vector<8x512xbf16>, vector<512x256xbf16>, vector<8x256xf32> -> vector<8x256xf32>
    %c0_9 = arith.constant 0 : index
    %c0_10 = arith.constant 0 : index
    %12 = vector.load %arg5[%c0_9, %c0_10] : memref<1x256xf32, #tpu.memory_space<vmem>>, vector<1x256xf32>
    %13 = vector.broadcast %12 : vector<1x256xf32> to vector<8x256xf32>
    %14 = arith.addf %11, %13 : vector<8x256xf32>
    %cst_11 = arith.constant 0.000000e+00 : f32
    %15 = vector.broadcast %cst_11 : f32 to vector<8x256xf32>
    %16 = arith.maximumf %14, %15 : vector<8x256xf32>
    %17 = arith.truncf %16 : vector<8x256xf32> to vector<8x256xbf16>
    %c0_12 = arith.constant 0 : index
    %c0_13 = arith.constant 0 : index
    %18 = vector.load %arg6[%c0_12, %c0_13] : memref<256x128xbf16, #tpu.memory_space<vmem>>, vector<256x128xbf16>
    %cst_14 = arith.constant dense<0.000000e+00> : vector<8x128xf32>
    %19 = tpu.matmul %17, %18, %cst_14 {dimension_numbers = #tpu.dot_dimension_numbers<[1], [0], [0], [1], [0, 0, 1, 1], [], []>} : vector<8x256xbf16>, vector<256x128xbf16>, vector<8x128xf32> -> vector<8x128xf32>
    %c0_15 = arith.constant 0 : index
    %c0_16 = arith.constant 0 : index
    %20 = vector.load %arg7[%c0_15, %c0_16] : memref<1x128xf32, #tpu.memory_space<vmem>>, vector<1x128xf32>
    %21 = vector.broadcast %20 : vector<1x128xf32> to vector<8x128xf32>
    %22 = arith.addf %19, %21 : vector<8x128xf32>
    %cst_17 = arith.constant 0.000000e+00 : f32
    %23 = vector.broadcast %cst_17 : f32 to vector<8x128xf32>
    %24 = arith.maximumf %22, %23 : vector<8x128xf32>
    %25 = arith.truncf %24 : vector<8x128xf32> to vector<8x128xbf16>
    %c0_18 = arith.constant 0 : index
    %c0_19 = arith.constant 0 : index
    %26 = vector.load %arg8[%c0_18, %c0_19] : memref<128x128xbf16, #tpu.memory_space<vmem>>, vector<128x128xbf16>
    %cst_20 = arith.constant dense<0.000000e+00> : vector<8x128xf32>
    %27 = tpu.matmul %25, %26, %cst_20 {dimension_numbers = #tpu.dot_dimension_numbers<[1], [0], [0], [1], [0, 0, 1, 1], [], []>} : vector<8x128xbf16>, vector<128x128xbf16>, vector<8x128xf32> -> vector<8x128xf32>
    %c0_21 = arith.constant 0 : index
    %c0_22 = arith.constant 0 : index
    %28 = vector.load %arg9[%c0_21, %c0_22] : memref<1x128xf32, #tpu.memory_space<vmem>>, vector<1x128xf32>
    %29 = vector.broadcast %28 : vector<1x128xf32> to vector<8x128xf32>
    %30 = arith.addf %27, %29 : vector<8x128xf32>
    %c0_23 = arith.constant 0 : index
    %c0_24 = arith.constant 0 : index
    %31 = vector.load %arg10[%c0_23, %c0_24] : memref<8x128xf32, #tpu.memory_space<vmem>>, vector<8x128xf32>
    tpu.vector_store %arg10[%c0_23, %c0_24], %30 {strides = array<i32>} : memref<8x128xf32, #tpu.memory_space<vmem>>, vector<8x128xf32>,
    return
  }
  func.func @transform_0(%arg0: i32) -> (i32, i32) {
    %c0_i32 = arith.constant 0 : i32
    %c0_i32_0 = arith.constant 0 : i32
    return %arg0, %c0_i32 : i32, i32
  }
  func.func @transform_1(%arg0: i32) -> (i32, i32) {
    %c0_i32 = arith.constant 0 : i32
    %c0_i32_0 = arith.constant 0 : i32
    %c0_i32_1 = arith.constant 0 : i32
    return %c0_i32, %c0_i32_0 : i32, i32
  }
  func.func @transform_2(%arg0: i32) -> (i32, i32) {
    %c0_i32 = arith.constant 0 : i32
    %c0_i32_0 = arith.constant 0 : i32
    %c0_i32_1 = arith.constant 0 : i32
    return %c0_i32, %c0_i32_0 : i32, i32
  }
  func.func @transform_3(%arg0: i32) -> (i32, i32) {
    %c0_i32 = arith.constant 0 : i32
    %c0_i32_0 = arith.constant 0 : i32
    %c0_i32_1 = arith.constant 0 : i32
    return %c0_i32, %c0_i32_0 : i32, i32
  }
  func.func @transform_4(%arg0: i32) -> (i32, i32) {
    %c0_i32 = arith.constant 0 : i32
    %c0_i32_0 = arith.constant 0 : i32
    %c0_i32_1 = arith.constant 0 : i32
    return %c0_i32, %c0_i32_0 : i32, i32
  }
  func.func @transform_5(%arg0: i32) -> (i32, i32) {
    %c0_i32 = arith.constant 0 : i32
    %c0_i32_0 = arith.constant 0 : i32
    %c0_i32_1 = arith.constant 0 : i32
    return %c0_i32, %c0_i32_0 : i32, i32
  }
  func.func @transform_6(%arg0: i32) -> (i32, i32) {
    %c0_i32 = arith.constant 0 : i32
    %c0_i32_0 = arith.constant 0 : i32
    %c0_i32_1 = arith.constant 0 : i32
    return %c0_i32, %c0_i32_0 : i32, i32
  }
  func.func @transform_7(%arg0: i32) -> (i32, i32) {
    %c0_i32 = arith.constant 0 : i32
    %c0_i32_0 = arith.constant 0 : i32
    %c0_i32_1 = arith.constant 0 : i32
    return %c0_i32, %c0_i32_0 : i32, i32
  }
  func.func @transform_8(%arg0: i32) -> (i32, i32) {
    %c0_i32 = arith.constant 0 : i32
    %c0_i32_0 = arith.constant 0 : i32
    %c0_i32_1 = arith.constant 0 : i32
    return %c0_i32, %c0_i32_0 : i32, i32
  }
  func.func @transform_9(%arg0: i32) -> (i32, i32) {
    %c0_i32 = arith.constant 0 : i32
    %c0_i32_0 = arith.constant 0 : i32
    return %arg0, %c0_i32 : i32, i32
  }
}

</mosaic_0001>

<bundles_post_ra>
// kernel: tpu_custom_call.1
= control target key start
LH: loop header
LB: loop body
LE: loop exit
PB: predicated region body
PF: predicated region fallthrough
CT: control target
= control target key end

     0   :  { %14 = vsyncpa [#allocation3], 0  ;;  %s1750_s0 = inlined_call_operand.hbm [shape: f32[8,64], index: 0, kind: input, shape index: {}]   ;;  %s1751_s1 = inlined_call_operand.hbm [shape: bf16[64,512], index: 1, kind: input, shape index: {}]   ;;  %s1752_s2 = inlined_call_operand.vmem [shape: f32[1,512], index: 2, kind: input, shape index: {}]   ;;  %s1753_s3 = inlined_call_operand.hbm [shape: bf16[512,256], index: 3, kind: input, shape index: {}]   ;;  %s1754_s4 = inlined_call_operand.vmem [shape: f32[1,256], index: 4, kind: input, shape index: {}]   ;;  %s1755_s5 = inlined_call_operand.hbm [shape: bf16[256,128], index: 5, kind: input, shape index: {}]   ;;  %s1756_s6 = inlined_call_operand.vmem [shape: f32[1,128], index: 6, kind: input, shape index: {}]   ;;  %s1757_s7 = inlined_call_operand.hbm [shape: bf16[128,128], index: 7, kind: input, shape index: {}]   ;;  %s1758_s8 = inlined_call_operand.vmem [shape: f32[1,128], index: 8, kind: input, shape index: {}]   ;;  %s1759_s9 = inlined_call_operand.hbm [shape: f32[8,128], index: 9, kind: output, shape index: {}]  }
   0x1   :  { %15 = vsyncpa [#allocation6], 0 }
   0x2   :  { %16 = vsyncpa [#allocation9], 0 }
   0x3   :  { %17 = vsyncpa [#allocation4], 0  ;;  %s1566_s30 = smov [#allocation5]   ;;  %s1426_s13 = scalar_lea.hbm %s1751_s1, 2048 }
   0x4   :  { %s33_s10 = sshll.u32 %s1566_s30, 4  ;;  %p1427_p0 = scmp.ne.s32.totalorder %s1751_s1, %s1426_s13  ;;  %s34_s10 = int_to_ptr.vmem [resolvable:$true] %s33_s10 }
   0x5   :  { %p1430_p1 = scmp.lt.u32.totalorder %s1426_s13, %s1751_s1 }
   0x7   :  { %p1432_p2 = pnand %p1430_p1, %p1427_p0 }
   0x9   :  { %1435 = shalt.err (!%p1432_p2)
}
   0xa   :  { %s1436_s18 = scalar_lea.vmem %s34_s10, 2048  ;;  %p1441_p4 = scmp.lt.s32.totalorder %s34_s10, %s34_s10 }
   0xb   :  { %p1437_p3 = scmp.ne.s32.totalorder %s34_s10, %s1436_s18  ;;  %p1442_p5 = scmp.lt.s32.totalorder %s1436_s18, %s1436_s18 }
   0xd   :  { %p1443_p6 = por %p1442_p5, %p1441_p4 }
   0xf   :  { %p1444_p7 = pnand %p1443_p6, %p1437_p3 }
  0x11   :  { %1447 = shalt.err (!%p1444_p7)
}
  0x12   :  { %s1567_s19 = smov 256   ;;  %s1568_s20 = smov 16  }
  0x13   :  { %39 = dma.hbm_to_vmem [thread:$0]  %s1751_s1, 2048, %s34_s10, [#allocation6], %s1567_s19, %s1567_s19, %s1568_s20  }
  0x14   :  { %s1569_s23 = smov [#allocation8]   ;;  %s1448_s27 = scalar_lea.hbm %s1755_s5, 2048 }
  0x15   :  { %s61_s24 = sshll.u32 %s1569_s23, 4  ;;  %p1449_p8 = scmp.ne.s32.totalorder %s1755_s5, %s1448_s27  ;;  %s62_s24 = int_to_ptr.vmem [resolvable:$true] %s61_s24 }
  0x16   :  { %p1452_p9 = scmp.lt.u32.totalorder %s1448_s27, %s1755_s5 }
  0x18   :  { %p1454_p10 = pnand %p1452_p9, %p1449_p8 }
  0x1a   :  { %1457 = shalt.err (!%p1454_p10)
}
  0x1b   :  { %s1458_s12 = scalar_lea.vmem %s62_s24, 2048  ;;  %p1463_p12 = scmp.lt.s32.totalorder %s62_s24, %s62_s24 }
  0x1c   :  { %p1459_p11 = scmp.ne.s32.totalorder %s62_s24, %s1458_s12  ;;  %p1464_p13 = scmp.lt.s32.totalorder %s1458_s12, %s1458_s12 }
  0x1e   :  { %p1465_p0 = por %p1464_p13, %p1463_p12 }
  0x20   :  { %p1466_p1 = pnand %p1465_p0, %p1459_p11 }
  0x22   :  { %1469 = shalt.err (!%p1466_p1)
}
  0x23   :  { %s1570_s1 = smov 64   ;;  %s1571_s10 = smov 4  }
  0x24   :  { %67 = dma.hbm_to_vmem [thread:$0]  %s1755_s5, 2048, %s62_s24, [#allocation9], %s1570_s1, %s1570_s1, %s1571_s10  }
  0x25   :  { %s1572_s15 = smov [#allocation2]   ;;  %s1573_s17 = smov [#allocation7]  }
  0x26   :  { %s24_s16 = sshll.u32 %s1572_s15, 4  ;;  %s47_s18 = sshll.u32 %s1573_s17, 4  ;;  %s25_s16 = int_to_ptr.vmem [resolvable:$true] %s24_s16  ;;  %s1658_s18 = int_to_ptr.vmem [resolvable:$true] %s47_s18 }
  0x27   :  { %s1470_s21 = scalar_lea.hbm %s1750_s0, 128 }
  0x28   :  { %p1471_p2 = scmp.ne.s32.totalorder %s1750_s0, %s1470_s21  ;;  %p1474_p3 = scmp.lt.u32.totalorder %s1470_s21, %s1750_s0 }
  0x2a   :  { %p1476_p4 = pnand %p1474_p3, %p1471_p2 }
  0x2c   :  { %1479 = shalt.err (!%p1476_p4)
}
  0x2d   :  { %s1480_s5 = scalar_lea.vmem %s25_s16, 128  ;;  %p1485_p6 = scmp.lt.s32.totalorder %s25_s16, %s25_s16 }
  0x2e   :  { %p1481_p5 = scmp.ne.s32.totalorder %s25_s16, %s1480_s5  ;;  %p1486_p7 = scmp.lt.s32.totalorder %s1480_s5, %s1480_s5 }
  0x30   :  { %p1487_p8 = por %p1486_p7, %p1485_p6 }
  0x32   :  { %p1488_p9 = pnand %p1487_p8, %p1481_p5 }
  0x34   :  { %1491 = shalt.err (!%p1488_p9)
}
  0x35   :  { %27 = dma.hbm_to_vmem [thread:$0]  %s1750_s0, 128, %s25_s16, [#allocation3]  }
  0x36   :  { %s1492_s30 = scalar_lea.hbm %s1753_s3, 8192 }
  0x37   :  { %p1493_p10 = scmp.ne.s32.totalorder %s1753_s3, %s1492_s30  ;;  %p1496_p11 = scmp.lt.u32.totalorder %s1492_s30, %s1753_s3 }
  0x39   :  { %p1498_p12 = pnand %p1496_p11, %p1493_p10 }
  0x3b   :  { %1501 = shalt.err (!%p1498_p12)
}
  0x3c   :  { %s1502_s15 = scalar_lea.vmem %s1658_s18, 8192  ;;  %p1507_p0 = scmp.lt.s32.totalorder %s1658_s18, %s1658_s18 }
  0x3d   :  { %p1503_p13 = scmp.ne.s32.totalorder %s1658_s18, %s1502_s15  ;;  %p1508_p1 = scmp.lt.s32.totalorder %s1502_s15, %s1502_s15 }
  0x3f   :  { %p1509_p2 = por %p1508_p1, %p1507_p0 }
  0x41   :  { %p1510_p3 = pnand %p1509_p2, %p1503_p13 }
  0x43   :  { %1513 = shalt.err (!%p1510_p3)
}
  0x44   :  { %s1574_s0 = smov 128   ;;  %s1575_s16 = smov 8  }
  0x45   :  { %53 = dma.hbm_to_vmem [thread:$0]  %s1753_s3, 8192, %s1658_s18, [#allocation6], %s1574_s0, %s1574_s0, %s1575_s16  }
  0x46   :  { %s1576_s20 = smov [#allocation10]   ;;  %s1514_s25 = scalar_lea.hbm %s1757_s7, 1024 }
  0x47   :  { %s75_s21 = sshll.u32 %s1576_s20, 4  ;;  %p1515_p4 = scmp.ne.s32.totalorder %s1757_s7, %s1514_s25  ;;  %s76_s21 = int_to_ptr.vmem [resolvable:$true] %s75_s21 }
  0x48   :  { %p1518_p5 = scmp.lt.u32.totalorder %s1514_s25, %s1757_s7 }
  0x4a   :  { %p1520_p6 = pnand %p1518_p5, %p1515_p4 }
  0x4c   :  { %1523 = shalt.err (!%p1520_p6)
}
  0x4d   :  { %s1524_s28 = scalar_lea.vmem %s76_s21, 1024  ;;  %p1529_p8 = scmp.lt.s32.totalorder %s76_s21, %s76_s21 }
  0x4e   :  { %p1525_p7 = scmp.ne.s32.totalorder %s76_s21, %s1524_s28  ;;  %p1530_p9 = scmp.lt.s32.totalorder %s1524_s28, %s1524_s28 }
  0x50   :  { %p1531_p10 = por %p1530_p9, %p1529_p8 }
  0x52   :  { %p1532_p11 = pnand %p1531_p10, %p1525_p7 }
  0x54   :  { %1535 = shalt.err (!%p1532_p11)
}
  0x55   :  { %81 = dma.hbm_to_vmem [thread:$0]  %s1757_s7, 1024, %s76_s21, [#allocation9], %s1570_s1, %s1570_s1, %s1571_s10  }
  0x56   :  { %1558 = dma.done.wait [#allocation3], 128  }
  0x57   :  { %1559 = vsyncadd [#allocation3], 4294967168 }
  0x58   :  { %1560 = dma.done.wait [#allocation6], 10240  }
  0x59   :  { %1561 = vsyncadd [#allocation6], 4294957056 }
  0x5a   :  { %1562 = dma.done.wait [#allocation9], 3072  }
  0x5b   :  { %1563 = vsyncadd [#allocation9], 4294964224  ;;  %v1577_v0 = vmov 0   ;;  %v1282_v1 = vld [vmem:[#allocation5 + $0x4] ss:$16 sps:$4 sm:$0xff]   ;;  %v100_v9 = vld [vmem:[#allocation2] sm:$0xff] }
  0x5c   :  { %256 = vmatprep.mubr.bf16.mxu1 %v1577_v0  ;;  %v1284_v2 = vld [vmem:[#allocation5] ss:$16 sps:$4 sm:$0xff]   ;;  %224 = vmatprep.subr.bf16.mxu1 %v1282_v1  ;;  %v1285_v3 = vld [vmem:[#allocation5 + $0x24] ss:$16 sps:$4 sm:$0xff]   ;;  %v1296_v10 = vld [vmem:[#allocation5 + $0xc] ss:$16 sps:$4 sm:$0xff]   ;;  %v101_v14 = vpack.c.bf16 %v100_v9, %v100_v9 }
  0x5d   :  { %225 = vmatpush1.bf16.msra.mxu1 %v1284_v2  ;;  %v1287_v4 = vld [vmem:[#allocation5 + $0x20] ss:$16 sps:$4 sm:$0xff]   ;;  %v1288_v5 = vld [vmem:[#allocation5 + $0x44] ss:$16 sps:$4 sm:$0xff]   ;;  %v1294_v15 = vld [vmem:[#allocation5 + $0x8] ss:$16 sps:$4 sm:$0xff]  }
  0x5e   :  { %226 = vmatprep.subr.bf16.mxu1 %v1285_v3  ;;  %v1290_v6 = vld [vmem:[#allocation5 + $0x40] ss:$16 sps:$4 sm:$0xff]   ;;  %v1291_v7 = vld [vmem:[#allocation5 + $0x64] ss:$16 sps:$4 sm:$0xff]   ;;  %vm220_vm0 = vcmask 523264   ;;  %v1404_v54 = vld [vmem:[#allocation8 + $0x48] sm:$0xff]  }
  0x5f   :  { %v1293_v8 = vld [vmem:[#allocation5 + $0x60] ss:$16 sps:$4 sm:$0xff]   ;;  %v1306_v11 = vld [vmem:[#allocation7 + $0x4] ss:$8 sps:$4 sm:$0xff]   ;;  %v1309_v13 = vld [vmem:[#allocation7 + $0x14] ss:$8 sps:$4 sm:$0xff]  }
  0x60   :  { %v1308_v12 = vld [vmem:[#allocation7] ss:$8 sps:$4 sm:$0xff]   ;;  %710 = vmatprep.subr.bf16.mxu0 %v1306_v11  ;;  %v1311_v16 = vld [vmem:[#allocation7 + $0x10] ss:$8 sps:$4 sm:$0xff]   ;;  %v1299_v17 = vld [vmem:[#allocation5 + $0x2c] ss:$16 sps:$4 sm:$0xff]  }
  0x61   :  { %227 = vmatpush1.bf16.msra.mxu1 %v1287_v4  ;;  %711 = vmatpush1.bf16.msra.mxu0 %v1308_v12  ;;  %v1312_v18 = vld [vmem:[#allocation7 + $0x24] ss:$8 sps:$4 sm:$0xff]   ;;  %v1297_v19 = vld [vmem:[#allocation5 + $0x28] ss:$16 sps:$4 sm:$0xff]   ;;  %v1315_v21 = vld [vmem:[#allocation7 + $0x34] ss:$8 sps:$4 sm:$0xff]  }
  0x62   :  { %228 = vmatprep.subr.bf16.mxu1 %v1288_v5  ;;  %712 = vmatprep.subr.bf16.mxu0 %v1309_v13  ;;  %v1314_v20 = vld [vmem:[#allocation7 + $0x20] ss:$8 sps:$4 sm:$0xff]   ;;  %v1302_v22 = vld [vmem:[#allocation5 + $0x4c] ss:$16 sps:$4 sm:$0xff]   ;;  %v1317_v24 = vld [vmem:[#allocation7 + $0x30] ss:$8 sps:$4 sm:$0xff]  }
  0x63   :  { %v1300_v23 = vld [vmem:[#allocation5 + $0x48] ss:$16 sps:$4 sm:$0xff]   ;;  %v1318_v25 = vld [vmem:[#allocation7 + $0x44] ss:$8 sps:$4 sm:$0xff]   ;;  %v1321_v29 = vld [vmem:[#allocation7 + $0x54] ss:$8 sps:$4 sm:$0xff]  }
  0x64   :  { %v1305_v26 = vld [vmem:[#allocation5 + $0x6c] ss:$16 sps:$4 sm:$0xff]   ;;  %v1303_v27 = vld [vmem:[#allocation5 + $0x68] ss:$16 sps:$4 sm:$0xff]   ;;  %v1402_v52 = vld [vmem:[#allocation8 + $0x40] sm:$0xff]   ;;  %vm1579_vm1 = vmmov 0  }
  0x65   :  { %229 = vmatpush1.bf16.msra.mxu1 %v1290_v6  ;;  %713 = vmatpush1.bf16.msra.mxu0 %v1311_v16  ;;  %v1320_v28 = vld [vmem:[#allocation7 + $0x40] ss:$8 sps:$4 sm:$0xff]   ;;  %v1323_v30 = vld [vmem:[#allocation7 + $0x50] ss:$8 sps:$4 sm:$0xff]   ;;  %v1324_v31 = vld [vmem:[#allocation7 + $0x64] ss:$8 sps:$4 sm:$0xff]  }
  0x66   :  { %230 = vmatprep.subr.bf16.mxu1 %v1291_v7  ;;  %714 = vmatprep.subr.bf16.mxu0 %v1312_v18  ;;  %v1326_v32 = vld [vmem:[#allocation7 + $0x60] ss:$8 sps:$4 sm:$0xff]   ;;  %v1327_v33 = vld [vmem:[#allocation7 + $0x74] ss:$8 sps:$4 sm:$0xff]   ;;  %v1329_v34 = vld [vmem:[#allocation7 + $0x70] ss:$8 sps:$4 sm:$0xff]  }
  0x67   :  { %v1330_v35 = vld [vmem:[#allocation7 + $0x84] ss:$8 sps:$4 sm:$0xff]   ;;  %v1332_v36 = vld [vmem:[#allocation7 + $0x80] ss:$8 sps:$4 sm:$0xff]   ;;  %v1333_v37 = vld [vmem:[#allocation7 + $0x94] ss:$8 sps:$4 sm:$0xff]  }
  0x68   :  { %v1335_v38 = vld [vmem:[#allocation7 + $0x90] ss:$8 sps:$4 sm:$0xff]   ;;  %v1336_v39 = vld [vmem:[#allocation7 + $0xa4] ss:$8 sps:$4 sm:$0xff]   ;;  %v1338_v40 = vld [vmem:[#allocation7 + $0xa0] ss:$8 sps:$4 sm:$0xff]  }
  0x69   :  { %231 = vmatpush1.bf16.msra.mxu1 %v1293_v8  ;;  %715 = vmatpush1.bf16.msra.mxu0 %v1314_v20  ;;  %v1339_v41 = vld [vmem:[#allocation7 + $0xb4] ss:$8 sps:$4 sm:$0xff]   ;;  %v1341_v42 = vld [vmem:[#allocation7 + $0xb0] ss:$8 sps:$4 sm:$0xff]   ;;  %v1342_v43 = vld [vmem:[#allocation7 + $0xc4] ss:$8 sps:$4 sm:$0xff]  }
  0x6a   :  { %265 = vmatprep.subr.bf16.mxu1 %v1296_v10  ;;  %716 = vmatprep.subr.bf16.mxu0 %v1315_v21  ;;  %v1344_v44 = vld [vmem:[#allocation7 + $0xc0] ss:$8 sps:$4 sm:$0xff]   ;;  %v1345_v45 = vld [vmem:[#allocation7 + $0xd4] ss:$8 sps:$4 sm:$0xff]   ;;  %v1347_v46 = vld [vmem:[#allocation7 + $0xd0] ss:$8 sps:$4 sm:$0xff]  }
  0x6b   :  { %v1348_v47 = vld [vmem:[#allocation7 + $0xe4] ss:$8 sps:$4 sm:$0xff]   ;;  %v1350_v48 = vld [vmem:[#allocation7 + $0xe0] ss:$8 sps:$4 sm:$0xff]   ;;  %v1351_v49 = vld [vmem:[#allocation7 + $0xf4] ss:$8 sps:$4 sm:$0xff]  }
  0x6c   :  { %1118 = vmatmul.mubr.msk.bf16.vlgmr.msra.gmra.mrb[0].mxu1 %vm220_vm0, %v101_v14  ;;  %v1353_v50 = vld [vmem:[#allocation7 + $0xf0] ss:$8 sps:$4 sm:$0xff]   ;;  %v1356_v51 = vld [vmem:[#allocation7 + $0x104] ss:$8 sps:$4 sm:$0xff]   ;;  %v1354_v16 = vld [vmem:[#allocation7 + $0x100] ss:$8 sps:$4 sm:$0xff]  }
  0x6d   :  { %266 = vmatpush1.bf16.msra.mxu1 %v1294_v15  ;;  %297 = vmatprep.mubr.bf16.mxu1 %v1577_v0  ;;  %v1403_v53 = vld [vmem:[#allocation8] sm:$0xff]   ;;  %v1405_v55 = vld [vmem:[#allocation8 + $0x8] sm:$0xff]   ;;  %v1406_v56 = vld [vmem:[#allocation8 + $0x50] sm:$0xff]   ;;  %v120_v0 = vlaneseq  ;;  %s1580_s12 = smov [#allocation11]  }
  0x6e   :  { %267 = vmatprep.subr.bf16.mxu1 %v1299_v17  ;;  %717 = vmatpush1.bf16.msra.mxu0 %v1317_v24  ;;  %v1407_v57 = vld [vmem:[#allocation8 + $0x10] sm:$0xff]   ;;  %v1408_v58 = vld [vmem:[#allocation8 + $0x58] sm:$0xff]   ;;  %v1410_v60 = vld [vmem:[#allocation8 + $0x60] sm:$0xff]   ;;  %s1091_s13 = sshll.u32 %s1580_s12, 4  ;;  %s1092_s13 = int_to_ptr.vmem [resolvable:$true] %s1091_s13 }
  0x6f   :  { %718 = vmatprep.subr.bf16.mxu0 %v1318_v25  ;;  %v1409_v59 = vld [vmem:[#allocation8 + $0x18] sm:$0xff]   ;;  %v1411_v61 = vld [vmem:[#allocation8 + $0x20] sm:$0xff]   ;;  %v1412_v62 = vld [vmem:[#allocation8 + $0x68] sm:$0xff]   ;;  %v1706_v1 = vshrl.u32 %v120_v0, 7  ;;  %p1541_p13 = scmp.lt.s32.totalorder %s1092_s13, %s1092_s13 }
  0x70   :  { %v1413_v63 = vld [vmem:[#allocation8 + $0x28] sm:$0xff]   ;;  %v1712_v3 = vld [vmem:[%s1752_s2] sm:$0xf]  ;;  %v1359_v18 = vld [vmem:[#allocation7 + $0x114] ss:$8 sps:$4 sm:$0xff]  }
  0x71   :  { %268 = vmatpush1.bf16.msra.mxu1 %v1297_v19  ;;  %v122_v2 = vsub.s32 0, %v1706_v1  ;;  %v126_v4 = vsub.s32 1, %v1706_v1  ;;  %v1357_v19 = vld [vmem:[#allocation7 + $0x110] ss:$8 sps:$4 sm:$0xff]   ;;  %v134_v20 = vsub.s32 3, %v1706_v1 }
  0x72   :  { %269 = vmatprep.subr.bf16.mxu1 %v1302_v22  ;;  %719 = vmatpush1.bf16.msra.mxu0 %v1320_v28  ;;  %v1362_v21 = vld [vmem:[#allocation7 + $0x124] ss:$8 sps:$4 sm:$0xff]   ;;  %v1360_v22 = vld [vmem:[#allocation7 + $0x120] ss:$8 sps:$4 sm:$0xff]   ;;  %v1365_v24 = vld [vmem:[#allocation7 + $0x134] ss:$8 sps:$4 sm:$0xff]  }
  0x73   :  { %720 = vmatprep.subr.bf16.mxu0 %v1321_v29  ;;  %v123_v5 = vrot.slane %v1712_v3, %v122_v2  ;;  %v127_v6 = vrot.slane %v1712_v3, %v126_v4  ;;  %v1416_v0 = vld [vmem:[#allocation8 + $0x78] sm:$0xff]  }
  0x75   :  { %270 = vmatpush1.bf16.msra.mxu1 %v1300_v23  ;;  %v135_v23 = vrot.slane %v1712_v3, %v134_v20  ;;  %v1419_v20 = vld [vmem:[#allocation10 + $0x8] sm:$0xff]  }
  0x76   :  { %271 = vmatprep.subr.bf16.mxu1 %v1305_v26  ;;  %721 = vmatpush1.bf16.msra.mxu0 %v1323_v30  ;;  %v1368_v30 = vld [vmem:[#allocation7 + $0x144] ss:$8 sps:$4 sm:$0xff]  }
  0x77   :  { %722 = vmatprep.subr.bf16.mxu0 %v1324_v31 }
  0x79   :  { %272 = vmatpush1.bf16.msra.mxu1 %v1303_v27  ;;  %v1363_v27 = vld [vmem:[#allocation7 + $0x130] ss:$8 sps:$4 sm:$0xff]  }
  0x7a   :  { %723 = vmatpush1.bf16.msra.mxu0 %v1326_v32  ;;  %1210 = vmatprep.subr.bf16.mxu1 %v1402_v52  ;;  %v1395_v52 = vld [vmem:[#allocation7 + $0x1d4] ss:$8 sps:$4 sm:$0xff]  }
  0x7b   :  { %724 = vmatprep.subr.bf16.mxu0 %v1327_v33  ;;  %v1366_v33 = vld [vmem:[#allocation7 + $0x140] ss:$8 sps:$4 sm:$0xff]  }
  0x7c   :  { %1119 = vmatmul.mubr.msk.bf16.vlgmr.msra.gmra.mrb[4].mxu1 %vm220_vm0, %v101_v14 }
  0x7d   :  { %1211 = vmatpush3.bf16.msra.mxu1 %v1403_v53  ;;  %v1393_v53 = vld [vmem:[#allocation7 + $0x1d0] ss:$8 sps:$4 sm:$0xff]  }
  0x7e   :  { %725 = vmatpush1.bf16.msra.mxu0 %v1329_v34  ;;  %1212 = vmatprep.subr.bf16.mxu1 %v1404_v54 }
  0x7f   :  { %726 = vmatprep.subr.bf16.mxu0 %v1330_v35  ;;  %v1371_v35 = vld [vmem:[#allocation7 + $0x154] ss:$8 sps:$4 sm:$0xff]  }
  0x81   :  { %1213 = vmatpush3.bf16.msra.mxu1 %v1405_v55  ;;  %v1398_v55 = vld [vmem:[#allocation7 + $0x1e4] ss:$8 sps:$4 sm:$0xff]  }
  0x82   :  { %727 = vmatpush1.bf16.msra.mxu0 %v1332_v36  ;;  %1214 = vmatprep.subr.bf16.mxu1 %v1406_v56  ;;  %v1369_v36 = vld [vmem:[#allocation7 + $0x150] ss:$8 sps:$4 sm:$0xff]   ;;  %v1396_v56 = vld [vmem:[#allocation7 + $0x1e0] ss:$8 sps:$4 sm:$0xff]  }
  0x83   :  { %728 = vmatprep.subr.bf16.mxu0 %v1333_v37  ;;  %v1374_v37 = vld [vmem:[#allocation7 + $0x164] ss:$8 sps:$4 sm:$0xff]  }
  0x85   :  { %1215 = vmatpush3.bf16.msra.mxu1 %v1407_v57 }
  0x86   :  { %729 = vmatpush1.bf16.msra.mxu0 %v1335_v38  ;;  %1216 = vmatprep.subr.bf16.mxu1 %v1408_v58  ;;  %v1372_v38 = vld [vmem:[#allocation7 + $0x160] ss:$8 sps:$4 sm:$0xff]   ;;  %v1401_v58 = vld [vmem:[#allocation7 + $0x1f4] ss:$8 sps:$4 sm:$0xff]  }
  0x87   :  { %730 = vmatprep.subr.bf16.mxu0 %v1336_v39  ;;  %v1377_v39 = vld [vmem:[#allocation7 + $0x174] ss:$8 sps:$4 sm:$0xff]  }
  0x89   :  { %1217 = vmatpush3.bf16.msra.mxu1 %v1409_v59  ;;  %v1399_v59 = vld [vmem:[#allocation7 + $0x1f0] ss:$8 sps:$4 sm:$0xff]  }
  0x8a   :  { %731 = vmatpush1.bf16.msra.mxu0 %v1338_v40  ;;  %1218 = vmatprep.subr.bf16.mxu1 %v1410_v60  ;;  %v1375_v40 = vld [vmem:[#allocation7 + $0x170] ss:$8 sps:$4 sm:$0xff]  }
  0x8b   :  { %732 = vmatprep.subr.bf16.mxu0 %v1339_v41  ;;  %v1380_v41 = vld [vmem:[#allocation7 + $0x184] ss:$8 sps:$4 sm:$0xff]  }
  0x8d   :  { %1219 = vmatpush3.bf16.msra.mxu1 %v1411_v61 }
  0x8e   :  { %733 = vmatpush1.bf16.msra.mxu0 %v1341_v42  ;;  %1220 = vmatprep.subr.bf16.mxu1 %v1412_v62  ;;  %v1378_v42 = vld [vmem:[#allocation7 + $0x180] ss:$8 sps:$4 sm:$0xff]   ;;  %v1414_v62 = vld [vmem:[#allocation8 + $0x70] sm:$0xff]  }
  0x8f   :  { %734 = vmatprep.subr.bf16.mxu0 %v1342_v43  ;;  %v1383_v43 = vld [vmem:[#allocation7 + $0x194] ss:$8 sps:$4 sm:$0xff]  }
  0x91   :  { %1221 = vmatpush3.bf16.msra.mxu1 %v1413_v63  ;;  %v1415_v63 = vld [vmem:[#allocation8 + $0x30] sm:$0xff]  }
  0x92   :  { %735 = vmatpush1.bf16.msra.mxu0 %v1344_v44  ;;  %v1381_v44 = vld [vmem:[#allocation7 + $0x190] ss:$8 sps:$4 sm:$0xff]   ;;  %1222 = vmatprep.subr.bf16.mxu1 %v1414_v62 }
  0x93   :  { %736 = vmatprep.subr.bf16.mxu0 %v1345_v45  ;;  %v1386_v45 = vld [vmem:[#allocation7 + $0x1a4] ss:$8 sps:$4 sm:$0xff]  }
  0x95   :  { %1223 = vmatpush3.bf16.msra.mxu1 %v1415_v63 }
  0x96   :  { %737 = vmatpush1.bf16.msra.mxu0 %v1347_v46  ;;  %v1384_v46 = vld [vmem:[#allocation7 + $0x1a0] ss:$8 sps:$4 sm:$0xff]   ;;  %1224 = vmatprep.subr.bf16.mxu1 %v1416_v0 }
  0x97   :  { %738 = vmatprep.subr.bf16.mxu0 %v1348_v47  ;;  %v1389_v47 = vld [vmem:[#allocation7 + $0x1b4] ss:$8 sps:$4 sm:$0xff]  }
  0x9a   :  { %739 = vmatpush1.bf16.msra.mxu0 %v1350_v48  ;;  %v1387_v48 = vld [vmem:[#allocation7 + $0x1b0] ss:$8 sps:$4 sm:$0xff]  }
  0x9b   :  { %740 = vmatprep.subr.bf16.mxu0 %v1351_v49  ;;  %v1392_v49 = vld [vmem:[#allocation7 + $0x1c4] ss:$8 sps:$4 sm:$0xff]  }
  0x9e   :  { %741 = vmatpush1.bf16.msra.mxu0 %v1353_v50  ;;  %v1390_v50 = vld [vmem:[#allocation7 + $0x1c0] ss:$8 sps:$4 sm:$0xff]  }
  0x9f   :  { %751 = vmatprep.subr.bf16.mxu0 %v1356_v51  ;;  %v130_v51 = vsub.s32 2, %v1706_v1  ;;  %v1421_v1 = vld [vmem:[#allocation10 + $0x18] sm:$0xff]  }
  0xa1   :  { %v131_v54 = vrot.slane %v1712_v3, %v130_v51  ;;  %v1417_v3 = vld [vmem:[#allocation8 + $0x38] sm:$0xff]  }
  0xa2   :  { %1225 = vmatpush3.bf16.msra.mxu1 %v1417_v3 }
 0x13f   :  { %v258_v7 = vpop.f32.mrb[0].mxu1 }
 0x140   :  { %v259_v8 = vadd.f32 %v258_v7, %v123_v5  ;;  %v260_v9 = vpop.f32.mrb[1].mxu1  ;;  %v1578_v5 = vmov 0.0  }
 0x141   :  { %v261_v10 = vadd.f32 %v260_v9, %v127_v6  ;;  %v262_v11 = vpop.f32.mrb[2].mxu1  ;;  %1241 = vmatprep.subr.bf16.mxu1 %v1578_v5  ;;  %v378_v6 = vld [vmem:[%s1754_s4] sm:$0x3] }
 0x142   :  { %v306_v12 = vmax.f32 %v259_v8, 0.0  ;;  %v263_v13 = vpop.f32.mrb[3].mxu1  ;;  %v383_v7 = vrot.slane %v378_v6, %v122_v2  ;;  %v387_v8 = vrot.slane %v378_v6, %v126_v4  ;;  %v1420_v2 = vld [vmem:[#allocation10 + $0x10] sm:$0xff]   ;;  %v1422_v4 = vld [vmem:[#allocation10 + $0x20] sm:$0xff]  }
 0x143   :  { %v307_v14 = vmax.f32 %v261_v10, 0.0 }
 0x144   :  { %v310_v17 = vpack.c.bf16 %v306_v12, %v306_v12 }
 0x145   :  { %v311_v15 = vpack.c.bf16 %v307_v14, %v307_v14 }
 0x147   :  { %742 = vmatprep.mubr.bf16.mxu0 %v311_v15 }
 0x148   :  { %743 = vmatmul.mubr.bf16.vlgmr.msra.gmra.mrb[0].mxu0 %v310_v17 }
 0x149   :  { %752 = vmatpush1.bf16.msra.mxu0 %v1354_v16 }
 0x14a   :  { %753 = vmatprep.subr.bf16.mxu0 %v1359_v18  ;;  %v1418_v18 = vld [vmem:[#allocation10] sm:$0xff]  }
 0x14d   :  { %754 = vmatpush1.bf16.msra.mxu0 %v1357_v19 }
 0x14e   :  { %755 = vmatprep.subr.bf16.mxu0 %v1362_v21  ;;  %v1423_v21 = vld [vmem:[#allocation10 + $0x28] sm:$0xff]  }
 0x14f   :  { %v299_v25 = vpop.f32.mrb[4].mxu1 }
 0x150   :  { %v301_v26 = vpop.f32.mrb[5].mxu1  ;;  %v300_v57 = vadd.f32 %v299_v25, %v131_v54  ;;  %v1184_v25 = vld [vmem:[%s1756_s6] ss:$0 sm:$0xff]  ;;  %s1536_s6 = scalar_lea.vmem %s1092_s13, 128 }
 0x151   :  { %756 = vmatpush1.bf16.msra.mxu0 %v1360_v22  ;;  %v302_v28 = vadd.f32 %v301_v26, %v135_v23  ;;  %v303_v29 = vpop.f32.mrb[6].mxu1  ;;  %v1424_v22 = vld [vmem:[#allocation10 + $0x30] sm:$0xff]   ;;  %v1425_v23 = vld [vmem:[#allocation10 + $0x38] sm:$0xff]   ;;  %p1537_p12 = scmp.ne.s32.totalorder %s1092_s13, %s1536_s6  ;;  %p1542_p0 = scmp.lt.s32.totalorder %s1536_s6, %s1536_s6 }
 0x152   :  { %757 = vmatprep.subr.bf16.mxu0 %v1365_v24  ;;  %v304_v31 = vpop.f32.mrb[7].mxu1  ;;  %v308_v60 = vmax.f32 %v300_v57, 0.0 }
 0x153   :  { %v309_v32 = vmax.f32 %v302_v28, 0.0  ;;  %p1543_p1 = por %p1542_p0, %p1541_p13 }
 0x154   :  { %v312_v61 = vpack.c.bf16 %v308_v60, %v308_v60 }
 0x155   :  { %758 = vmatpush1.bf16.msra.mxu0 %v1363_v27  ;;  %v313_v34 = vpack.c.bf16 %v309_v32, %v309_v32  ;;  %p1544_p2 = pnand %p1543_p1, %p1537_p12 }
 0x156   :  { %759 = vmatprep.subr.bf16.mxu0 %v1368_v30 }
 0x157   :  { %783 = vmatprep.mubr.bf16.mxu0 %v313_v34 }
 0x159   :  { %760 = vmatpush1.bf16.msra.mxu0 %v1366_v33  ;;  %v1201_v33 = vld [vmem:[%s1758_s8] ss:$0 sm:$0xff] }
 0x15a   :  { %761 = vmatprep.subr.bf16.mxu0 %v1371_v35 }
 0x15d   :  { %762 = vmatpush1.bf16.msra.mxu0 %v1369_v36 }
 0x15e   :  { %763 = vmatprep.subr.bf16.mxu0 %v1374_v37 }
 0x161   :  { %764 = vmatpush1.bf16.msra.mxu0 %v1372_v38 }
 0x162   :  { %765 = vmatprep.subr.bf16.mxu0 %v1377_v39 }
 0x165   :  { %766 = vmatpush1.bf16.msra.mxu0 %v1375_v40 }
 0x166   :  { %767 = vmatprep.subr.bf16.mxu0 %v1380_v41 }
 0x169   :  { %768 = vmatpush1.bf16.msra.mxu0 %v1378_v42 }
 0x16a   :  { %769 = vmatprep.subr.bf16.mxu0 %v1383_v43 }
 0x16d   :  { %770 = vmatpush1.bf16.msra.mxu0 %v1381_v44 }
 0x16e   :  { %771 = vmatprep.subr.bf16.mxu0 %v1386_v45 }
 0x171   :  { %772 = vmatpush1.bf16.msra.mxu0 %v1384_v46 }
 0x172   :  { %773 = vmatprep.subr.bf16.mxu0 %v1389_v47 }
 0x175   :  { %774 = vmatpush1.bf16.msra.mxu0 %v1387_v48 }
 0x176   :  { %775 = vmatprep.subr.bf16.mxu0 %v1392_v49 }
 0x179   :  { %776 = vmatpush1.bf16.msra.mxu0 %v1390_v50 }
 0x17a   :  { %777 = vmatprep.subr.bf16.mxu0 %v1395_v52 }
 0x17d   :  { %778 = vmatpush1.bf16.msra.mxu0 %v1393_v53 }
 0x17e   :  { %779 = vmatprep.subr.bf16.mxu0 %v1398_v55 }
 0x181   :  { %780 = vmatpush1.bf16.msra.mxu0 %v1396_v56 }
 0x182   :  { %781 = vmatprep.subr.bf16.mxu0 %v1401_v58 }
 0x185   :  { %782 = vmatpush1.bf16.msra.mxu0 %v1399_v59 }
 0x188   :  { %784 = vmatmul.mubr.bf16.vlgmr.msra.gmra.mrb[0].mxu0 %v312_v61 }
 0x25b   :  { %v785_v9 = vpop.f32.mrb[0].mxu0 }
 0x25c   :  { %v1261_v10 = vadd.f32 %v785_v9, %v383_v7  ;;  %v787_v11 = vpop.f32.mrb[1].mxu0 }
 0x25d   :  { %v1262_v12 = vadd.f32 %v787_v11, %v387_v8  ;;  %v789_v13 = vpop.f32.mrb[2].mxu0 }
 0x25e   :  { %v792_v14 = vmax.f32 %v1261_v10, 0.0  ;;  %v790_v15 = vpop.f32.mrb[3].mxu0 }
 0x25f   :  { %v793_v16 = vmax.f32 %v1262_v12, 0.0 }
 0x260   :  { %v794_v19 = vpack.c.bf16 %v792_v14, %v792_v14 }
 0x261   :  { %v795_v17 = vpack.c.bf16 %v793_v16, %v793_v16 }
 0x263   :  { %963 = vmatprep.mubr.bf16.mxu1 %v795_v17 }
 0x264   :  { %964 = vmatmul.mubr.bf16.vlgmr.msra.gmra.mrb[8].mxu1 %v794_v19 }
 0x265   :  { %1242 = vmatpush3.bf16.msra.mxu1 %v1418_v18  ;;  %1257 = vmatprep.mubr.msk.bf16.mxu1 %vm1579_vm1, %v1578_v5 }
 0x266   :  { %1243 = vmatprep.subr.bf16.mxu1 %v1578_v5 }
 0x269   :  { %1244 = vmatpush3.bf16.msra.mxu1 %v1419_v20 }
 0x26a   :  { %1245 = vmatprep.subr.bf16.mxu1 %v1578_v5 }
 0x26d   :  { %1246 = vmatpush3.bf16.msra.mxu1 %v1420_v2 }
 0x26e   :  { %1247 = vmatprep.subr.bf16.mxu1 %v1578_v5 }
 0x271   :  { %1248 = vmatpush3.bf16.msra.mxu1 %v1421_v1 }
 0x272   :  { %1249 = vmatprep.subr.bf16.mxu1 %v1578_v5 }
 0x275   :  { %1250 = vmatpush3.bf16.msra.mxu1 %v1422_v4 }
 0x276   :  { %1251 = vmatprep.subr.bf16.mxu1 %v1578_v5 }
 0x279   :  { %1252 = vmatpush3.bf16.msra.mxu1 %v1423_v21 }
 0x27a   :  { %1253 = vmatprep.subr.bf16.mxu1 %v1578_v5 }
 0x27d   :  { %1254 = vmatpush3.bf16.msra.mxu1 %v1424_v22 }
 0x27e   :  { %1255 = vmatprep.subr.bf16.mxu1 %v1578_v5 }
 0x281   :  { %1256 = vmatpush3.bf16.msra.mxu1 %v1425_v23 }
 0x337   :  { %v1226_v24 = vpop.f32.mrb[8].mxu1 }
 0x338   :  { %v1227_v26 = vpop.f32.mrb[9].mxu1 }
 0x339   :  { %v1228_v27 = vadd.f32 %v1227_v26, %v1226_v24  ;;  %v1229_v28 = vpop.f32.mrb[10].mxu1 }
 0x33a   :  { %v1230_v29 = vpop.f32.mrb[11].mxu1 }
 0x33b   :  { %v966_v30 = vadd.f32 %v1228_v27, %v1184_v25 }
 0x33d   :  { %v971_v31 = vmax.f32 %v966_v30, 0.0 }
 0x33f   :  { %v972_v32 = vpack.c.bf16 %v971_v31, %v971_v31 }
 0x341   :  { %1258 = vmatmul.mubr.bf16.vlgmr.msra.gmra.mrb[12].mxu1 %v972_v32 }
 0x414   :  { %v1078_v34 = vpop.f32.mrb[12].mxu1 }
 0x415   :  { %v1079_v35 = vadd.f32 %v1201_v33, %v1078_v34  ;;  %v1259_v36 = vpop.f32.mrb[13].mxu1 }
 0x416   :  { %v1081_v37 = vpop.f32.mrb[14].mxu1 }
 0x417   :  { %1084 = vst [vmem:[#allocation11] sm:$0xff] %v1079_v35  ;;  %v1260_v38 = vpop.f32.mrb[15].mxu1 }
 0x418   :  { %1547 = shalt.err (!%p1544_p2)
}
 0x419   :  { %s1548_s8 = scalar_lea.hbm %s1759_s9, 128 }
 0x41a   :  { %p1549_p3 = scmp.ne.s32.totalorder %s1759_s9, %s1548_s8  ;;  %p1552_p4 = scmp.lt.u32.totalorder %s1548_s8, %s1759_s9 }
 0x41c   :  { %p1554_p5 = pnand %p1552_p4, %p1549_p3 }
 0x41e   :  { %1557 = shalt.err (!%p1554_p5)
}
 0x41f   :  { %1094 = dma.vmem_to_hbm [thread:$0]  %s1092_s13, 128, %s1759_s9, [#allocation4]  }
 0x420   :  { %1564 = dma.done.wait [#allocation4], 128  }
 0x421   :  { %1565 = vsyncadd [#allocation4], 4294967168 }
 0x422   :  { %1098 = vsyncpa [#allocation3], 1 }
 0x423   :  { %1099 = vsyncpa [#allocation6], 1 }
 0x424   :  { %1100 = vsyncpa [#allocation9], 1 }
 0x425   :  { %1101 = vsyncpa [#allocation4], 1 }

</bundles_post_ra>
